<compile_context>
chip_gen: v6e
topology: v6e:2x2x1
jax: 0.10.0
libtpu: 0.0.40
codegen_flags: <defaults>
</compile_context>

<pallas_src>
import jax
import jax.numpy as jnp
from jax.experimental import pallas as pl
from jax.experimental.pallas import tpu as pltpu


def _round_up(v, m):
    return ((v + m - 1) // m) * m


def _fm_kernel(x_ref, y_ref, w1_ref, b1_ref, w2_ref, b2_ref, o_ref):
    # x_ref:  [1, F*T, TP]   (F-major fold of (F, T) on the sublane axis)
    # y_ref:  [1, T, TP]
    # w*_ref: [T, T] in SMEM, b*_ref: [T] in SMEM
    # o_ref:  [1, T, TP]
    t_dim = o_ref.shape[1]
    n_f = x_ref.shape[1] // t_dim

    # ---- FM term: streaming reduction over F (per-lane VPU only) ----
    xx = x_ref[0].astype(jnp.float32)                 # [F*T, TP], dense sublanes
    xsq = xx * xx                                     # dense square on full vregs
    s1 = xx[0:t_dim, :]
    s2 = xsq[0:t_dim, :]
    for f in range(1, n_f):                           # F is small; unrolled at trace time
        lo = f * t_dim
        hi = lo + t_dim
        s1 = s1 + xx[lo:hi, :]
        s2 = s2 + xsq[lo:hi, :]
    fm = 0.5 * (s1 * s1 - s2)                         # [T, TP]

    # ---- 1x1 conv -> ReLU -> 1x1 conv on the T (channel) axis, on the VPU ----
    # Each output row is a chain of scalar(SMEM) * row(VMEM) FMAs; T is small
    # (module in_dim/out_dim), so the unrolled T^2 chain is negligible work.
    y_rows = [y_ref[0, c:c + 1, :].astype(jnp.float32) for c in range(t_dim)]
    h_rows = []
    for o in range(t_dim):
        acc = y_rows[0] * w1_ref[o, 0] + b1_ref[o]
        for c in range(1, t_dim):
            acc = acc + y_rows[c] * w1_ref[o, c]
        h_rows.append(jnp.maximum(acc, 0.0))          # ReLU
    o_rows = []
    for o in range(t_dim):
        acc = h_rows[0] * w2_ref[o, 0] + b2_ref[o]
        for c in range(1, t_dim):
            acc = acc + h_rows[c] * w2_ref[o, c]
        o_rows.append(acc)
    conv = jnp.concatenate(o_rows, axis=0)            # [T, TP]

    o_ref[0] = (fm + conv).astype(o_ref.dtype)


def fm_forward(x, y, w1, b1, w2, b2, *, x_tile_budget_bytes=4 << 20):
    """x: [B,T,D,N,F], y: [B,T,D,N], w*: [T,T], b*: [T] -> [B,T,D,N] (f32)."""
    B, T, D, N, F = x.shape
    P = D * N

    # Single fused layout copy: [B,T,D,N,F] -> [B, F*T, P] (lane-dense P, dense
    # F*T sublanes).  No padding of P; the reshape of y and of the output are
    # free metadata changes.
    # TODO(synk): produce x in this layout upstream to remove this extra pass.
    x_r = jnp.moveaxis(x.reshape(B, T, P, F), 3, 1).reshape(B, F * T, P)
    y_r = y.reshape(B, T, P)

    # Lane-tile size: multiple of 128, sized against an x-block byte budget.
    bytes_per_lane = max(F * T, 1) * x.dtype.itemsize
    tp_max = max(128, (x_tile_budget_bytes // bytes_per_lane // 128) * 128)
    TP = min(_round_up(P, 128), tp_max)
    # v7x megacore: keep >= 2 parallel grid steps when possible so both TCs work.
    if B * ((P + TP - 1) // TP) < 2 and TP > 128:
        TP = max(128, _round_up((P + 1) // 2, 128))
    n_p_tiles = (P + TP - 1) // TP

    flops = B * P * (3 * F * T + 4 * T * T + 5 * T)
    bytes_accessed = (
        x_r.size * x_r.dtype.itemsize
        + y_r.size * y_r.dtype.itemsize
        + B * T * P * 4
        + (2 * T * T + 2 * T) * 4
    )

    out = pl.pallas_call(
        _fm_kernel,
        out_shape=jax.ShapeDtypeStruct((B, T, P), jnp.float32),
        grid_spec=pltpu.PrefetchScalarGridSpec(
            num_scalar_prefetch=0,
            grid=(B, n_p_tiles),
            in_specs=[
                pl.BlockSpec((1, F * T, TP), lambda b, p: (b, 0, p)),  # x
                pl.BlockSpec((1, T, TP), lambda b, p: (b, 0, p)),      # y
                pl.BlockSpec(memory_space=pltpu.MemorySpace.SMEM),     # w1
                pl.BlockSpec(memory_space=pltpu.MemorySpace.SMEM),     # b1
                pl.BlockSpec(memory_space=pltpu.MemorySpace.SMEM),     # w2
                pl.BlockSpec(memory_space=pltpu.MemorySpace.SMEM),     # b2
            ],
            out_specs=pl.BlockSpec((1, T, TP), lambda b, p: (b, 0, p)),
        ),
        compiler_params=pltpu.CompilerParams(
            dimension_semantics=("parallel", "parallel"),
            vmem_limit_bytes=32 * 1024 * 1024,
        ),
        cost_estimate=pl.CostEstimate(
            flops=flops, transcendentals=0, bytes_accessed=bytes_accessed),
    )(x_r, y_r, w1, b1, w2, b2)

    return out.reshape(B, T, D, N)


def fm_reference(x, y, w1, b1, w2, b2):
    # Pure-JAX reference of the PyTorch forward (f32 matmuls for tight tolerance).
    hi = jax.lax.Precision.HIGHEST
    h = jnp.einsum("oc,bchw->bohw", w1, y, precision=hi) + b1[None, :, None, None]
    h = jnp.maximum(h, 0.0)
    h = jnp.einsum("oc,bchw->bohw", w2, h, precision=hi) + b2[None, :, None, None]
    x1 = jnp.sum(x, axis=-1) ** 2
    x2 = jnp.sum(x * x, axis=-1)
    return 0.5 * (x1 - x2) + h


if __name__ == "__main__":
    # Small shapes consistent with the module: in_dim = out_dim = T (channel axis of y).
    B, T, D, N, F = 2, 4, 6, 16, 8

    key = jax.random.PRNGKey(0)
    kx, ky, kw1, kb1, kw2, kb2 = jax.random.split(key, 6)

    x = jax.random.normal(kx, (B, T, D, N, F), dtype=jnp.float32)
    y = jax.random.normal(ky, (B, T, D, N), dtype=jnp.float32)

    # Deterministic synthetic parameters (Conv2d 1x1 weights [out, in], biases [out]).
    w1 = 0.1 * jax.random.normal(kw1, (T, T), dtype=jnp.float32)
    b1 = 0.1 * jax.random.normal(kb1, (T,), dtype=jnp.float32)
    w2 = 0.1 * jax.random.normal(kw2, (T, T), dtype=jnp.float32)
    b2 = 0.1 * jax.random.normal(kb2, (T,), dtype=jnp.float32)

    fm_jit = jax.jit(fm_forward)
    out = jax.block_until_ready(fm_jit(x, y, w1, b1, w2, b2))

    ref = fm_reference(x, y, w1, b1, w2, b2)
    assert out.shape == (B, T, D, N)
    assert jnp.allclose(out, ref, atol=1e-4, rtol=1e-4), "mismatch vs reference"

    print("KERNEL_OK")
</pallas_src>

<mosaic_0001>
module attributes {stable_mosaic.version = 11 : i64} {
  func.func @_fm_kernel(%arg0: i32, %arg1: i32, %arg2: memref<1x32x128xf32, #tpu.memory_space<vmem>>, %arg3: memref<1x4x128xf32, #tpu.memory_space<vmem>>, %arg4: memref<4x4xf32, #tpu.memory_space<smem>>, %arg5: memref<4xf32, #tpu.memory_space<smem>>, %arg6: memref<4x4xf32, #tpu.memory_space<smem>>, %arg7: memref<4xf32, #tpu.memory_space<smem>>, %arg8: memref<1x4x128xf32, #tpu.memory_space<vmem>>) attributes {dimension_semantics = [#tpu.dimension_semantics<parallel>, #tpu.dimension_semantics<parallel>], iteration_bounds = array<i64: 2, 1>, scalar_prefetch = 0 : i64, scratch_operands = 0 : i64, tpu.core_type = #tpu.core_type<tc>, window_params = [{transform_indices = @transform_0, window_bounds = array<i64: 1, 32, 128>}, {transform_indices = @transform_1, window_bounds = array<i64: 1, 4, 128>}, {transform_indices = @transform_2, window_bounds = array<i64: 4, 4>}, {transform_indices = @transform_3, window_bounds = array<i64: 4>}, {transform_indices = @transform_4, window_bounds = array<i64: 4, 4>}, {transform_indices = @transform_5, window_bounds = array<i64: 4>}, {transform_indices = @transform_6, window_bounds = array<i64: 1, 4, 128>}]} {
    %c0 = arith.constant 0 : index
    %c0_0 = arith.constant 0 : index
    %c0_1 = arith.constant 0 : index
    %0 = vector.load %arg2[%c0, %c0_0, %c0_1] : memref<1x32x128xf32, #tpu.memory_space<vmem>>, vector<1x32x128xf32>
    %1 = vector.shape_cast %0 : vector<1x32x128xf32> to vector<32x128xf32>
    %2 = arith.mulf %1, %1 : vector<32x128xf32>
    %3 = vector.extract_strided_slice %1 {offsets = [0, 0], sizes = [4, 128], strides = [1, 1]} : vector<32x128xf32> to vector<4x128xf32>
    %4 = vector.extract_strided_slice %2 {offsets = [0, 0], sizes = [4, 128], strides = [1, 1]} : vector<32x128xf32> to vector<4x128xf32>
    %5 = vector.extract_strided_slice %1 {offsets = [4, 0], sizes = [4, 128], strides = [1, 1]} : vector<32x128xf32> to vector<4x128xf32>
    %6 = arith.addf %3, %5 : vector<4x128xf32>
    %7 = vector.extract_strided_slice %2 {offsets = [4, 0], sizes = [4, 128], strides = [1, 1]} : vector<32x128xf32> to vector<4x128xf32>
    %8 = arith.addf %4, %7 : vector<4x128xf32>
    %9 = vector.extract_strided_slice %1 {offsets = [8, 0], sizes = [4, 128], strides = [1, 1]} : vector<32x128xf32> to vector<4x128xf32>
    %10 = arith.addf %6, %9 : vector<4x128xf32>
    %11 = vector.extract_strided_slice %2 {offsets = [8, 0], sizes = [4, 128], strides = [1, 1]} : vector<32x128xf32> to vector<4x128xf32>
    %12 = arith.addf %8, %11 : vector<4x128xf32>
    %13 = vector.extract_strided_slice %1 {offsets = [12, 0], sizes = [4, 128], strides = [1, 1]} : vector<32x128xf32> to vector<4x128xf32>
    %14 = arith.addf %10, %13 : vector<4x128xf32>
    %15 = vector.extract_strided_slice %2 {offsets = [12, 0], sizes = [4, 128], strides = [1, 1]} : vector<32x128xf32> to vector<4x128xf32>
    %16 = arith.addf %12, %15 : vector<4x128xf32>
    %17 = vector.extract_strided_slice %1 {offsets = [16, 0], sizes = [4, 128], strides = [1, 1]} : vector<32x128xf32> to vector<4x128xf32>
    %18 = arith.addf %14, %17 : vector<4x128xf32>
    %19 = vector.extract_strided_slice %2 {offsets = [16, 0], sizes = [4, 128], strides = [1, 1]} : vector<32x128xf32> to vector<4x128xf32>
    %20 = arith.addf %16, %19 : vector<4x128xf32>
    %21 = vector.extract_strided_slice %1 {offsets = [20, 0], sizes = [4, 128], strides = [1, 1]} : vector<32x128xf32> to vector<4x128xf32>
    %22 = arith.addf %18, %21 : vector<4x128xf32>
    %23 = vector.extract_strided_slice %2 {offsets = [20, 0], sizes = [4, 128], strides = [1, 1]} : vector<32x128xf32> to vector<4x128xf32>
    %24 = arith.addf %20, %23 : vector<4x128xf32>
    %25 = vector.extract_strided_slice %1 {offsets = [24, 0], sizes = [4, 128], strides = [1, 1]} : vector<32x128xf32> to vector<4x128xf32>
    %26 = arith.addf %22, %25 : vector<4x128xf32>
    %27 = vector.extract_strided_slice %2 {offsets = [24, 0], sizes = [4, 128], strides = [1, 1]} : vector<32x128xf32> to vector<4x128xf32>
    %28 = arith.addf %24, %27 : vector<4x128xf32>
    %29 = vector.extract_strided_slice %1 {offsets = [28, 0], sizes = [4, 128], strides = [1, 1]} : vector<32x128xf32> to vector<4x128xf32>
    %30 = arith.addf %26, %29 : vector<4x128xf32>
    %31 = vector.extract_strided_slice %2 {offsets = [28, 0], sizes = [4, 128], strides = [1, 1]} : vector<32x128xf32> to vector<4x128xf32>
    %32 = arith.addf %28, %31 : vector<4x128xf32>
    %33 = arith.mulf %30, %30 : vector<4x128xf32>
    %34 = arith.subf %33, %32 : vector<4x128xf32>
    %cst = arith.constant 5.000000e-01 : f32
    %35 = vector.broadcast %cst : f32 to vector<4x128xf32>
    %36 = arith.mulf %35, %34 : vector<4x128xf32>
    %c0_2 = arith.constant 0 : index
    %c0_3 = arith.constant 0 : index
    %c0_4 = arith.constant 0 : index
    %37 = vector.load %arg3[%c0_2, %c0_3, %c0_4] : memref<1x4x128xf32, #tpu.memory_space<vmem>>, vector<1x1x128xf32>
    %38 = vector.shape_cast %37 : vector<1x1x128xf32> to vector<1x128xf32>
    %c0_5 = arith.constant 0 : index
    %c1 = arith.constant 1 : index
    %c0_6 = arith.constant 0 : index
    %39 = vector.load %arg3[%c0_5, %c1, %c0_6] : memref<1x4x128xf32, #tpu.memory_space<vmem>>, vector<1x1x128xf32>
    %40 = vector.shape_cast %39 : vector<1x1x128xf32> to vector<1x128xf32>
    %c0_7 = arith.constant 0 : index
    %c2 = arith.constant 2 : index
    %c0_8 = arith.constant 0 : index
    %41 = vector.load %arg3[%c0_7, %c2, %c0_8] : memref<1x4x128xf32, #tpu.memory_space<vmem>>, vector<1x1x128xf32>
    %42 = vector.shape_cast %41 : vector<1x1x128xf32> to vector<1x128xf32>
    %c0_9 = arith.constant 0 : index
    %c3 = arith.constant 3 : index
    %c0_10 = arith.constant 0 : index
    %43 = vector.load %arg3[%c0_9, %c3, %c0_10] : memref<1x4x128xf32, #tpu.memory_space<vmem>>, vector<1x1x128xf32>
    %44 = vector.shape_cast %43 : vector<1x1x128xf32> to vector<1x128xf32>
    %c0_11 = arith.constant 0 : index
    %c0_12 = arith.constant 0 : index
    %45 = memref.load %arg4[%c0_11, %c0_12] : memref<4x4xf32, #tpu.memory_space<smem>>
    %46 = vector.broadcast %45 : f32 to vector<1x128xf32>
    %47 = arith.mulf %38, %46 : vector<1x128xf32>
    %c0_13 = arith.constant 0 : index
    %48 = memref.load %arg5[%c0_13] : memref<4xf32, #tpu.memory_space<smem>>
    %49 = vector.broadcast %48 : f32 to vector<1x128xf32>
    %50 = arith.addf %47, %49 : vector<1x128xf32>
    %c0_14 = arith.constant 0 : index
    %c1_15 = arith.constant 1 : index
    %51 = memref.load %arg4[%c0_14, %c1_15] : memref<4x4xf32, #tpu.memory_space<smem>>
    %52 = vector.broadcast %51 : f32 to vector<1x128xf32>
    %53 = arith.mulf %40, %52 : vector<1x128xf32>
    %54 = arith.addf %50, %53 : vector<1x128xf32>
    %c0_16 = arith.constant 0 : index
    %c2_17 = arith.constant 2 : index
    %55 = memref.load %arg4[%c0_16, %c2_17] : memref<4x4xf32, #tpu.memory_space<smem>>
    %56 = vector.broadcast %55 : f32 to vector<1x128xf32>
    %57 = arith.mulf %42, %56 : vector<1x128xf32>
    %58 = arith.addf %54, %57 : vector<1x128xf32>
    %c0_18 = arith.constant 0 : index
    %c3_19 = arith.constant 3 : index
    %59 = memref.load %arg4[%c0_18, %c3_19] : memref<4x4xf32, #tpu.memory_space<smem>>
    %60 = vector.broadcast %59 : f32 to vector<1x128xf32>
    %61 = arith.mulf %44, %60 : vector<1x128xf32>
    %62 = arith.addf %58, %61 : vector<1x128xf32>
    %cst_20 = arith.constant 0.000000e+00 : f32
    %63 = vector.broadcast %cst_20 : f32 to vector<1x128xf32>
    %64 = arith.maximumf %62, %63 : vector<1x128xf32>
    %c1_21 = arith.constant 1 : index
    %c0_22 = arith.constant 0 : index
    %65 = memref.load %arg4[%c1_21, %c0_22] : memref<4x4xf32, #tpu.memory_space<smem>>
    %66 = vector.broadcast %65 : f32 to vector<1x128xf32>
    %67 = arith.mulf %38, %66 : vector<1x128xf32>
    %c1_23 = arith.constant 1 : index
    %68 = memref.load %arg5[%c1_23] : memref<4xf32, #tpu.memory_space<smem>>
    %69 = vector.broadcast %68 : f32 to vector<1x128xf32>
    %70 = arith.addf %67, %69 : vector<1x128xf32>
    %c1_24 = arith.constant 1 : index
    %c1_25 = arith.constant 1 : index
    %71 = memref.load %arg4[%c1_24, %c1_25] : memref<4x4xf32, #tpu.memory_space<smem>>
    %72 = vector.broadcast %71 : f32 to vector<1x128xf32>
    %73 = arith.mulf %40, %72 : vector<1x128xf32>
    %74 = arith.addf %70, %73 : vector<1x128xf32>
    %c1_26 = arith.constant 1 : index
    %c2_27 = arith.constant 2 : index
    %75 = memref.load %arg4[%c1_26, %c2_27] : memref<4x4xf32, #tpu.memory_space<smem>>
    %76 = vector.broadcast %75 : f32 to vector<1x128xf32>
    %77 = arith.mulf %42, %76 : vector<1x128xf32>
    %78 = arith.addf %74, %77 : vector<1x128xf32>
    %c1_28 = arith.constant 1 : index
    %c3_29 = arith.constant 3 : index
    %79 = memref.load %arg4[%c1_28, %c3_29] : memref<4x4xf32, #tpu.memory_space<smem>>
    %80 = vector.broadcast %79 : f32 to vector<1x128xf32>
    %81 = arith.mulf %44, %80 : vector<1x128xf32>
    %82 = arith.addf %78, %81 : vector<1x128xf32>
    %cst_30 = arith.constant 0.000000e+00 : f32
    %83 = vector.broadcast %cst_30 : f32 to vector<1x128xf32>
    %84 = arith.maximumf %82, %83 : vector<1x128xf32>
    %c2_31 = arith.constant 2 : index
    %c0_32 = arith.constant 0 : index
    %85 = memref.load %arg4[%c2_31, %c0_32] : memref<4x4xf32, #tpu.memory_space<smem>>
    %86 = vector.broadcast %85 : f32 to vector<1x128xf32>
    %87 = arith.mulf %38, %86 : vector<1x128xf32>
    %c2_33 = arith.constant 2 : index
    %88 = memref.load %arg5[%c2_33] : memref<4xf32, #tpu.memory_space<smem>>
    %89 = vector.broadcast %88 : f32 to vector<1x128xf32>
    %90 = arith.addf %87, %89 : vector<1x128xf32>
    %c2_34 = arith.constant 2 : index
    %c1_35 = arith.constant 1 : index
    %91 = memref.load %arg4[%c2_34, %c1_35] : memref<4x4xf32, #tpu.memory_space<smem>>
    %92 = vector.broadcast %91 : f32 to vector<1x128xf32>
    %93 = arith.mulf %40, %92 : vector<1x128xf32>
    %94 = arith.addf %90, %93 : vector<1x128xf32>
    %c2_36 = arith.constant 2 : index
    %c2_37 = arith.constant 2 : index
    %95 = memref.load %arg4[%c2_36, %c2_37] : memref<4x4xf32, #tpu.memory_space<smem>>
    %96 = vector.broadcast %95 : f32 to vector<1x128xf32>
    %97 = arith.mulf %42, %96 : vector<1x128xf32>
    %98 = arith.addf %94, %97 : vector<1x128xf32>
    %c2_38 = arith.constant 2 : index
    %c3_39 = arith.constant 3 : index
    %99 = memref.load %arg4[%c2_38, %c3_39] : memref<4x4xf32, #tpu.memory_space<smem>>
    %100 = vector.broadcast %99 : f32 to vector<1x128xf32>
    %101 = arith.mulf %44, %100 : vector<1x128xf32>
    %102 = arith.addf %98, %101 : vector<1x128xf32>
    %cst_40 = arith.constant 0.000000e+00 : f32
    %103 = vector.broadcast %cst_40 : f32 to vector<1x128xf32>
    %104 = arith.maximumf %102, %103 : vector<1x128xf32>
    %c3_41 = arith.constant 3 : index
    %c0_42 = arith.constant 0 : index
    %105 = memref.load %arg4[%c3_41, %c0_42] : memref<4x4xf32, #tpu.memory_space<smem>>
    %106 = vector.broadcast %105 : f32 to vector<1x128xf32>
    %107 = arith.mulf %38, %106 : vector<1x128xf32>
    %c3_43 = arith.constant 3 : index
    %108 = memref.load %arg5[%c3_43] : memref<4xf32, #tpu.memory_space<smem>>
    %109 = vector.broadcast %108 : f32 to vector<1x128xf32>
    %110 = arith.addf %107, %109 : vector<1x128xf32>
    %c3_44 = arith.constant 3 : index
    %c1_45 = arith.constant 1 : index
    %111 = memref.load %arg4[%c3_44, %c1_45] : memref<4x4xf32, #tpu.memory_space<smem>>
    %112 = vector.broadcast %111 : f32 to vector<1x128xf32>
    %113 = arith.mulf %40, %112 : vector<1x128xf32>
    %114 = arith.addf %110, %113 : vector<1x128xf32>
    %c3_46 = arith.constant 3 : index
    %c2_47 = arith.constant 2 : index
    %115 = memref.load %arg4[%c3_46, %c2_47] : memref<4x4xf32, #tpu.memory_space<smem>>
    %116 = vector.broadcast %115 : f32 to vector<1x128xf32>
    %117 = arith.mulf %42, %116 : vector<1x128xf32>
    %118 = arith.addf %114, %117 : vector<1x128xf32>
    %c3_48 = arith.constant 3 : index
    %c3_49 = arith.constant 3 : index
    %119 = memref.load %arg4[%c3_48, %c3_49] : memref<4x4xf32, #tpu.memory_space<smem>>
    %120 = vector.broadcast %119 : f32 to vector<1x128xf32>
    %121 = arith.mulf %44, %120 : vector<1x128xf32>
    %122 = arith.addf %118, %121 : vector<1x128xf32>
    %cst_50 = arith.constant 0.000000e+00 : f32
    %123 = vector.broadcast %cst_50 : f32 to vector<1x128xf32>
    %124 = arith.maximumf %122, %123 : vector<1x128xf32>
    %c0_51 = arith.constant 0 : index
    %c0_52 = arith.constant 0 : index
    %125 = memref.load %arg6[%c0_51, %c0_52] : memref<4x4xf32, #tpu.memory_space<smem>>
    %126 = vector.broadcast %125 : f32 to vector<1x128xf32>
    %127 = arith.mulf %64, %126 : vector<1x128xf32>
    %c0_53 = arith.constant 0 : index
    %128 = memref.load %arg7[%c0_53] : memref<4xf32, #tpu.memory_space<smem>>
    %129 = vector.broadcast %128 : f32 to vector<1x128xf32>
    %130 = arith.addf %127, %129 : vector<1x128xf32>
    %c0_54 = arith.constant 0 : index
    %c1_55 = arith.constant 1 : index
    %131 = memref.load %arg6[%c0_54, %c1_55] : memref<4x4xf32, #tpu.memory_space<smem>>
    %132 = vector.broadcast %131 : f32 to vector<1x128xf32>
    %133 = arith.mulf %84, %132 : vector<1x128xf32>
    %134 = arith.addf %130, %133 : vector<1x128xf32>
    %c0_56 = arith.constant 0 : index
    %c2_57 = arith.constant 2 : index
    %135 = memref.load %arg6[%c0_56, %c2_57] : memref<4x4xf32, #tpu.memory_space<smem>>
    %136 = vector.broadcast %135 : f32 to vector<1x128xf32>
    %137 = arith.mulf %104, %136 : vector<1x128xf32>
    %138 = arith.addf %134, %137 : vector<1x128xf32>
    %c0_58 = arith.constant 0 : index
    %c3_59 = arith.constant 3 : index
    %139 = memref.load %arg6[%c0_58, %c3_59] : memref<4x4xf32, #tpu.memory_space<smem>>
    %140 = vector.broadcast %139 : f32 to vector<1x128xf32>
    %141 = arith.mulf %124, %140 : vector<1x128xf32>
    %142 = arith.addf %138, %141 : vector<1x128xf32>
    %c1_60 = arith.constant 1 : index
    %c0_61 = arith.constant 0 : index
    %143 = memref.load %arg6[%c1_60, %c0_61] : memref<4x4xf32, #tpu.memory_space<smem>>
    %144 = vector.broadcast %143 : f32 to vector<1x128xf32>
    %145 = arith.mulf %64, %144 : vector<1x128xf32>
    %c1_62 = arith.constant 1 : index
    %146 = memref.load %arg7[%c1_62] : memref<4xf32, #tpu.memory_space<smem>>
    %147 = vector.broadcast %146 : f32 to vector<1x128xf32>
    %148 = arith.addf %145, %147 : vector<1x128xf32>
    %c1_63 = arith.constant 1 : index
    %c1_64 = arith.constant 1 : index
    %149 = memref.load %arg6[%c1_63, %c1_64] : memref<4x4xf32, #tpu.memory_space<smem>>
    %150 = vector.broadcast %149 : f32 to vector<1x128xf32>
    %151 = arith.mulf %84, %150 : vector<1x128xf32>
    %152 = arith.addf %148, %151 : vector<1x128xf32>
    %c1_65 = arith.constant 1 : index
    %c2_66 = arith.constant 2 : index
    %153 = memref.load %arg6[%c1_65, %c2_66] : memref<4x4xf32, #tpu.memory_space<smem>>
    %154 = vector.broadcast %153 : f32 to vector<1x128xf32>
    %155 = arith.mulf %104, %154 : vector<1x128xf32>
    %156 = arith.addf %152, %155 : vector<1x128xf32>
    %c1_67 = arith.constant 1 : index
    %c3_68 = arith.constant 3 : index
    %157 = memref.load %arg6[%c1_67, %c3_68] : memref<4x4xf32, #tpu.memory_space<smem>>
    %158 = vector.broadcast %157 : f32 to vector<1x128xf32>
    %159 = arith.mulf %124, %158 : vector<1x128xf32>
    %160 = arith.addf %156, %159 : vector<1x128xf32>
    %c2_69 = arith.constant 2 : index
    %c0_70 = arith.constant 0 : index
    %161 = memref.load %arg6[%c2_69, %c0_70] : memref<4x4xf32, #tpu.memory_space<smem>>
    %162 = vector.broadcast %161 : f32 to vector<1x128xf32>
    %163 = arith.mulf %64, %162 : vector<1x128xf32>
    %c2_71 = arith.constant 2 : index
    %164 = memref.load %arg7[%c2_71] : memref<4xf32, #tpu.memory_space<smem>>
    %165 = vector.broadcast %164 : f32 to vector<1x128xf32>
    %166 = arith.addf %163, %165 : vector<1x128xf32>
    %c2_72 = arith.constant 2 : index
    %c1_73 = arith.constant 1 : index
    %167 = memref.load %arg6[%c2_72, %c1_73] : memref<4x4xf32, #tpu.memory_space<smem>>
    %168 = vector.broadcast %167 : f32 to vector<1x128xf32>
    %169 = arith.mulf %84, %168 : vector<1x128xf32>
    %170 = arith.addf %166, %169 : vector<1x128xf32>
    %c2_74 = arith.constant 2 : index
    %c2_75 = arith.constant 2 : index
    %171 = memref.load %arg6[%c2_74, %c2_75] : memref<4x4xf32, #tpu.memory_space<smem>>
    %172 = vector.broadcast %171 : f32 to vector<1x128xf32>
    %173 = arith.mulf %104, %172 : vector<1x128xf32>
    %174 = arith.addf %170, %173 : vector<1x128xf32>
    %c2_76 = arith.constant 2 : index
    %c3_77 = arith.constant 3 : index
    %175 = memref.load %arg6[%c2_76, %c3_77] : memref<4x4xf32, #tpu.memory_space<smem>>
    %176 = vector.broadcast %175 : f32 to vector<1x128xf32>
    %177 = arith.mulf %124, %176 : vector<1x128xf32>
    %178 = arith.addf %174, %177 : vector<1x128xf32>
    %c3_78 = arith.constant 3 : index
    %c0_79 = arith.constant 0 : index
    %179 = memref.load %arg6[%c3_78, %c0_79] : memref<4x4xf32, #tpu.memory_space<smem>>
    %180 = vector.broadcast %179 : f32 to vector<1x128xf32>
    %181 = arith.mulf %64, %180 : vector<1x128xf32>
    %c3_80 = arith.constant 3 : index
    %182 = memref.load %arg7[%c3_80] : memref<4xf32, #tpu.memory_space<smem>>
    %183 = vector.broadcast %182 : f32 to vector<1x128xf32>
    %184 = arith.addf %181, %183 : vector<1x128xf32>
    %c3_81 = arith.constant 3 : index
    %c1_82 = arith.constant 1 : index
    %185 = memref.load %arg6[%c3_81, %c1_82] : memref<4x4xf32, #tpu.memory_space<smem>>
    %186 = vector.broadcast %185 : f32 to vector<1x128xf32>
    %187 = arith.mulf %84, %186 : vector<1x128xf32>
    %188 = arith.addf %184, %187 : vector<1x128xf32>
    %c3_83 = arith.constant 3 : index
    %c2_84 = arith.constant 2 : index
    %189 = memref.load %arg6[%c3_83, %c2_84] : memref<4x4xf32, #tpu.memory_space<smem>>
    %190 = vector.broadcast %189 : f32 to vector<1x128xf32>
    %191 = arith.mulf %104, %190 : vector<1x128xf32>
    %192 = arith.addf %188, %191 : vector<1x128xf32>
    %c3_85 = arith.constant 3 : index
    %c3_86 = arith.constant 3 : index
    %193 = memref.load %arg6[%c3_85, %c3_86] : memref<4x4xf32, #tpu.memory_space<smem>>
    %194 = vector.broadcast %193 : f32 to vector<1x128xf32>
    %195 = arith.mulf %124, %194 : vector<1x128xf32>
    %196 = arith.addf %192, %195 : vector<1x128xf32>
    %197 = tpu.concatenate %142, %160, %178, %196 in 0 : vector<1x128xf32>, vector<1x128xf32>, vector<1x128xf32>, vector<1x128xf32> -> vector<4x128xf32>
    %198 = arith.addf %36, %197 : vector<4x128xf32>
    %c0_87 = arith.constant 0 : index
    %c0_88 = arith.constant 0 : index
    %c0_89 = arith.constant 0 : index
    %199 = vector.load %arg8[%c0_87, %c0_88, %c0_89] : memref<1x4x128xf32, #tpu.memory_space<vmem>>, vector<1x4x128xf32>
    %200 = vector.shape_cast %199 : vector<1x4x128xf32> to vector<4x128xf32>
    %201 = vector.shape_cast %198 : vector<4x128xf32> to vector<1x4x128xf32>
    tpu.vector_store %arg8[%c0_87, %c0_88, %c0_89], %201 {strides = array<i32>} : memref<1x4x128xf32, #tpu.memory_space<vmem>>, vector<1x4x128xf32>,
    return
  }
  func.func @transform_0(%arg0: i32, %arg1: i32) -> (i32, i32, i32) {
    %c0_i32 = arith.constant 0 : i32
    %c0_i32_0 = arith.constant 0 : i32
    return %arg0, %c0_i32, %arg1 : i32, i32, i32
  }
  func.func @transform_1(%arg0: i32, %arg1: i32) -> (i32, i32, i32) {
    %c0_i32 = arith.constant 0 : i32
    %c0_i32_0 = arith.constant 0 : i32
    return %arg0, %c0_i32, %arg1 : i32, i32, i32
  }
  func.func @transform_2(%arg0: i32, %arg1: i32) -> (i32, i32) {
    %c0_i32 = arith.constant 0 : i32
    %c0_i32_0 = arith.constant 0 : i32
    %c0_i32_1 = arith.constant 0 : i32
    return %c0_i32, %c0_i32_0 : i32, i32
  }
  func.func @transform_3(%arg0: i32, %arg1: i32) -> i32 {
    %c0_i32 = arith.constant 0 : i32
    %c0_i32_0 = arith.constant 0 : i32
    return %c0_i32 : i32
  }
  func.func @transform_4(%arg0: i32, %arg1: i32) -> (i32, i32) {
    %c0_i32 = arith.constant 0 : i32
    %c0_i32_0 = arith.constant 0 : i32
    %c0_i32_1 = arith.constant 0 : i32
    return %c0_i32, %c0_i32_0 : i32, i32
  }
  func.func @transform_5(%arg0: i32, %arg1: i32) -> i32 {
    %c0_i32 = arith.constant 0 : i32
    %c0_i32_0 = arith.constant 0 : i32
    return %c0_i32 : i32
  }
  func.func @transform_6(%arg0: i32, %arg1: i32) -> (i32, i32, i32) {
    %c0_i32 = arith.constant 0 : i32
    %c0_i32_0 = arith.constant 0 : i32
    return %arg0, %c0_i32, %arg1 : i32, i32, i32
  }
}

</mosaic_0001>

<bundles_post_ra>
// kernel: fm_forward.1
= control target key start
LH: loop header
LB: loop body
LE: loop exit
PB: predicated region body
PF: predicated region fallthrough
CT: control target
= control target key end

     0   :  { %11 = vsyncpa [#allocation3], 0  ;;  %s1196_s0 = inlined_call_operand.vmem [shape: f32[2,32,96], index: 0, kind: input, shape index: {}]   ;;  %s1197_s1 = inlined_call_operand.vmem [shape: f32[2,4,96], index: 1, kind: input, shape index: {}]   ;;  %s1198_s2 = inlined_call_operand.vmem [shape: f32[4,4], index: 2, kind: input, shape index: {}]   ;;  %s1199_s3 = inlined_call_operand.vmem [shape: f32[4], index: 3, kind: input, shape index: {}]   ;;  %s1200_s4 = inlined_call_operand.vmem [shape: f32[4,4], index: 4, kind: input, shape index: {}]   ;;  %s1201_s5 = inlined_call_operand.vmem [shape: f32[4], index: 5, kind: input, shape index: {}]   ;;  %s1202_s6 = inlined_call_operand.vmem [shape: f32[2,4,96], index: 6, kind: output, shape index: {}]  }
   0x1   :  { %12 = vsyncpa [#allocation5], 0 }
   0x2   :  { %13 = vsyncpa [#allocation8], 0  ;;  %s969_s21 = smov 0   ;;  %s971_s22 = smov 0  }
   0x3   :  { %s973_s23 = smov 0  }
   0x4 LB: > { %s228_s26 = sshll.u32 %s1199_s3, 4  ;;  %s713_s27 = sadd.s32 4294967295, %s928_s23   ;;  %s928_s23 = sphi %s973_s23, %s19_s23   ;;  %s924_s22 = sphi %s971_s22, %s1213_s22   ;;  %s920_s21 = sphi %s969_s21, %s1212_s21   ;;  %s229_s26 = int_to_ptr.vmem [resolvable:$true] %s228_s26 }
   0x5   : > { %p715_p0 = scmp.ge.s32.totalorder %s928_s23, 1  ;;  %p204_p1 = scmp.lt.s32.totalorder %s928_s23, 3 }
   0x6   : > { %p990_p2 = scmp.eq.s32.totalorder %s713_s27, 0  ;;  %s31_s30 = sadd.s32 1, %s924_s22 }
   0x7   : > { %p994_p3 = pnand %p715_p0, %p204_p1  ;;  %s217_s9 = sshll.u32 %s1198_s2, 4  ;;  %s218_s9 = int_to_ptr.vmem [resolvable:$true] %s217_s9 }
   0x8   : > { %s1206_s28 = scalar_select %p990_p2, 1, 0 }
   0x9   : > { %s1207_s29 = scalar_select %p994_p3, 1, 0 }
   0xa   : > { %p785_p4 = pneg %p994_p3  ;;  %p1010_p6 = scmp.ge.s32.totalorder %s31_s30, 2 }
   0xb   : > { %s239_s14 = sshll.u32 %s1200_s4, 4  ;;  %s834_s15 = scalar_lea.vmem %s229_s26, 16  ;;  %s240_s14 = int_to_ptr.vmem [resolvable:$true] %s239_s14 }
   0xc   : > { %p1006_p5 = pnand %p990_p2, %p785_p4  ;;  %p835_p7 = scmp.ne.s32.totalorder %s229_s26, %s834_s15 }
   0xd   : > { %p842_p11 = scmp.lt.s32.totalorder %s229_s26, %s229_s26  ;;  %p843_p12 = scmp.lt.s32.totalorder %s834_s15, %s834_s15 }
   0xe   : > { %p836_p8 = pneg %p1006_p5 }
   0xf   : > { %p844_p13 = por %p843_p12, %p842_p11 }
  0x10   : > { %p837_p9 = pnand %p836_p8, %p835_p7 }
  0x12   : > { %p838_p10 = pneg %p837_p9 }
  0x14   : > { %p845_p0 = pnand %p844_p13, %p838_p10 }
  0x16   : > { %848 = shalt.err (!%p845_p0)
}
  0x17   : > { %s930_s16 = smov [#allocation4]   ;;  %s1215_s30 = smov (%p1010_p6, %s31_s30), 0 }
  0x18   : > { %791 = dma.vmem_to_smem (!%p1006_p5), %s229_s26, 16, %s930_s16, [#allocation5]  }
  0x19   : > { %s849_s17 = scalar_lea.vmem %s218_s9, 64  ;;  %p857_p9 = scmp.lt.s32.totalorder %s218_s9, %s218_s9 }
  0x1a   : > { %p850_p1 = scmp.ne.s32.totalorder %s218_s9, %s849_s17  ;;  %p858_p2 = scmp.lt.s32.totalorder %s849_s17, %s849_s17 }
  0x1c   : > { %p852_p4 = pnand %p850_p1, %p836_p8  ;;  %p859_p11 = por %p858_p2, %p857_p9 }
  0x1e   : > { %p853_p7 = pneg %p852_p4 }
  0x20   : > { %p860_p10 = pnand %p859_p11, %p853_p7 }
  0x22   : > { %863 = shalt.err (!%p860_p10)
}
  0x23   : > { %s931_s18 = smov [#allocation2]   ;;  %s864_s19 = scalar_lea.vmem %s240_s14, 64 }
  0x24   : > { %788 = dma.vmem_to_smem (!%p1006_p5), %s218_s9, 64, %s931_s18, [#allocation3]  }
  0x25   : > { %p865_p6 = scmp.ne.s32.totalorder %s240_s14, %s864_s19  ;;  %p872_p0 = scmp.lt.s32.totalorder %s240_s14, %s240_s14 }
  0x26   : > { %p873_p1 = scmp.lt.s32.totalorder %s864_s19, %s864_s19 }
  0x27   : > { %p867_p12 = pnand %p865_p6, %p836_p8 }
  0x28   : > { %p874_p4 = por %p873_p1, %p872_p0 }
  0x29   : > { %p868_p13 = pneg %p867_p12 }
  0x2b   : > { %p875_p3 = pnand %p874_p4, %p868_p13 }
  0x2d   : > { %878 = shalt.err (!%p875_p3)
}
  0x2e   : > { %s932_s20 = smov [#allocation6]   ;;  %s250_s26 = sshll.u32 %s1201_s5, 4  ;;  %s251_s26 = int_to_ptr.vmem [resolvable:$true] %s250_s26 }
  0x2f   : > { %794 = dma.vmem_to_smem (!%p1006_p5), %s240_s14, 64, %s932_s20, [#allocation5]  }
  0x30   : > { %s879_s27 = scalar_lea.vmem %s251_s26, 16  ;;  %p887_p11 = scmp.lt.s32.totalorder %s251_s26, %s251_s26 }
  0x31   : > { %p880_p2 = scmp.ne.s32.totalorder %s251_s26, %s879_s27  ;;  %p888_p10 = scmp.lt.s32.totalorder %s879_s27, %s879_s27 }
  0x33   : > { %p882_p7 = pnand %p880_p2, %p836_p8  ;;  %p889_p6 = por %p888_p10, %p887_p11 }
  0x35   : > { %p883_p9 = pneg %p882_p7 }
  0x37   : > { %p890_p3 = pnand %p889_p6, %p883_p9 }
  0x39   : > { %893 = shalt.err (!%p890_p3)
}
  0x3a   : > { %s933_s7 = smov [#allocation7]   ;;  %p1210_p12 = scmp.ne.s32.totalorder %s1207_s29, 0 }
  0x3b   : > { %797 = dma.vmem_to_smem (!%p1006_p5), %s251_s26, 16, %s933_s7, [#allocation8]  }
  0x3c   : > { %284 = sbr.rel (%p1210_p12) target bundleno = 132 (0x84), region = 44  ;;  %p1211_p13 = scmp.ne.s32.totalorder (!%p1210_p12), %s1206_s28, 0 }
  0x41   : > { %907 = dma.done.wait (%p1211_p13), [#allocation3], 64  }
  0x42   : > { %909 = vsyncadd (%p1211_p13), [#allocation3], 4294967232 }
  0x43   : > { %911 = dma.done.wait (%p1211_p13), [#allocation5], 80  }
  0x44   : > { %913 = vsyncadd (%p1211_p13), [#allocation5], 4294967216 }
  0x45   : > { %915 = dma.done.wait (%p1211_p13), [#allocation8], 16  }
  0x46   : > { %917 = vsyncadd (%p1211_p13), [#allocation8], 4294967280 }
  0x47   : > { %302 = sfence }
  0x48   : > { %p339_p5 = scmp.lt.s32.totalorder %s920_s21, 1  ;;  %s414_s29 = sld [smem:[#allocation2]]  ;;  %vm571_vm0 = vcmask 1040384   ;;  %vm573_vm1 = vcmask 1041408   ;;  %vm575_vm2 = vcmask 1042432  }
  0x49   : > { %s417_s8 = sld [smem:[#allocation4]] }
  0x4a   : > { %s1217_s21 = smov (!%p339_p5, %s920_s21), 1  ;;  %s730_s9 = sld [smem:[#allocation2 + $0x1]] }
  0x4b   : > { %s768_s10 = sshll.u32 %s1217_s21, 5  ;;  %s728_s11 = sshll.u32 %s1217_s21, 2 }
  0x4c   : > { %s1071_s28 = scalar_lea.vmem %s1197_s1, %s728_s11  ;;  %s1076_s16 = scalar_lea.vmem %s1196_s0, %s768_s10 }
  0x4d   : > { %v1079_v0 = vld [vmem:[%s1071_s28] sm:$0x1]  ;;  %s731_s17 = sld [smem:[#allocation2 + $0x2]]  ;;  %v1086_v4 = vld [vmem:[%s1071_s28 + $0x1] sm:$0x1]  ;;  %v362_v11 = vld [vmem:[%s1076_s16 + $0x8] sm:$0xff] }
  0x4e   : > { %v415_v1 = vstv %s414_s29  ;;  %v361_v2 = vld [vmem:[%s1076_s16] sm:$0xff]  ;;  %s1082_s18 = sld [smem:[#allocation2 + $0x3]]  ;;  %v366_v19 = vmul.f32 %v362_v11, %v362_v11  ;;  %v380_v29 = vrot.slane %v362_v11, 4  ;;  %v363_v41 = vld [vmem:[%s1076_s16 + $0x10] sm:$0xff] }
  0x4f   : > { %v416_v3 = vmul.f32 %v415_v1, %v1079_v0  ;;  %s733_s19 = sld [smem:[#allocation2 + $0x80]]  ;;  %v418_v5 = vstv %s417_s8  ;;  %v365_v7 = vmul.f32 %v361_v2, %v361_v2  ;;  %v370_v8 = vrot.slane %v361_v2, 4  ;;  %v1095_v12 = vld [vmem:[%s1071_s28 + $0x2] sm:$0x1]  ;;  %v413_v23 = vld [vmem:[%s1071_s28 + $0x3] sm:$0x1] }
  0x50   : > { %v421_v6 = vstv %s730_s9  ;;  %s734_s20 = sld [smem:[#allocation4 + $0x1]]  ;;  %v384_v38 = vrot.slane %v366_v19, 4  ;;  %v367_v54 = vmul.f32 %v363_v41, %v363_v41  ;;  %v390_v55 = vrot.slane %v363_v41, 4 }
  0x51   : > { %s735_s24 = sld [smem:[#allocation2 + $0x81]]  ;;  %v419_v9 = vadd.f32 %v418_v5, %v416_v3  ;;  %v422_v10 = vmul.f32 %v421_v6, %v1086_v4  ;;  %v374_v14 = vrot.slane %v365_v7, 4  ;;  %v372_v16 = vadd.f32 %v370_v8, %v361_v2 }
  0x52   : > { %s1088_s25 = sld [smem:[#allocation2 + $0x82]] }
  0x53   : > { %s1091_s26 = sld [smem:[#allocation2 + $0x83]]  ;;  %v425_v13 = vstv %s731_s17  ;;  %v423_v20 = vadd.f32 %v422_v10, %v419_v9  ;;  %v376_v28 = vadd.f32 %v374_v14, %v365_v7  ;;  %v377_v30 = vadd.f32 %v372_v16, %v362_v11 }
  0x54   : > { %s1097_s27 = sld [smem:[#allocation2 + $0x100]]  ;;  %v426_v21 = vmul.f32 %v425_v13, %v1095_v12  ;;  %v429_v24 = vstv %s1082_s18  ;;  %v364_v13 = vld [vmem:[%s1076_s16 + $0x18] sm:$0xff] }
  0x55   : > { %v434_v15 = vstv %s733_s19  ;;  %s1099_s7 = sld [smem:[#allocation4 + $0x2]]  ;;  %v430_v35 = vmul.f32 %v429_v24, %v413_v23  ;;  %v378_v42 = vadd.f32 %v376_v28, %v366_v19  ;;  %v382_v50 = vadd.f32 %v380_v29, %v377_v30 }
  0x56   : > { %v435_v17 = vmul.f32 %v434_v15, %v1079_v0  ;;  %v437_v18 = vstv %s734_s20  ;;  %s1102_s29 = sld [smem:[#allocation2 + $0x101]]  ;;  %v427_v34 = vadd.f32 %v426_v21, %v423_v20 }
  0x57   : > { %v440_v22 = vstv %s735_s24  ;;  %s1105_s8 = sld [smem:[#allocation2 + $0x102]]  ;;  %v386_v58 = vadd.f32 %v384_v38, %v378_v42 }
  0x58   : > { %v438_v25 = vadd.f32 %v437_v18, %v435_v17  ;;  %v441_v26 = vmul.f32 %v440_v22, %v1086_v4  ;;  %v444_v27 = vstv %s1088_s25  ;;  %s1111_s9 = sld [smem:[#allocation2 + $0x103]]  ;;  %v431_v51 = vadd.f32 %v430_v35, %v427_v34 }
  0x59   : > { %s1113_s10 = sld [smem:[#allocation2 + $0x180]]  ;;  %v445_v32 = vmul.f32 %v444_v27, %v1095_v12  ;;  %v448_v36 = vstv %s1091_s26  ;;  %v394_v18 = vrot.slane %v367_v54, 4 }
  0x5a   : > { %v442_v31 = vadd.f32 %v441_v26, %v438_v25  ;;  %v453_v33 = vstv %s1097_s27  ;;  %s1117_s12 = sld [smem:[#allocation4 + $0x3]]  ;;  %v449_v47 = vmul.f32 %v448_v36, %v413_v23  ;;  %v1150_v3 = vmax.f32 %v431_v51, 0.0 }
  0x5b   : > { %v454_v37 = vmul.f32 %v453_v33, %v1079_v0  ;;  %s1121_s13 = sld [smem:[#allocation2 + $0x181]]  ;;  %v456_v39 = vstv %s1099_s7  ;;  %v400_v26 = vrot.slane %v364_v13, 4 }
  0x5c   : > { %v459_v40 = vstv %s1102_s29  ;;  %s1125_s28 = sld [smem:[#allocation2 + $0x182]]  ;;  %v446_v46 = vadd.f32 %v445_v32, %v442_v31 }
  0x5d   : > { %v457_v43 = vadd.f32 %v456_v39, %v454_v37  ;;  %v460_v44 = vmul.f32 %v459_v40, %v1086_v4  ;;  %v463_v45 = vstv %s1105_s8  ;;  %s1130_s14 = sld [smem:[#allocation2 + $0x183]] }
  0x5e   : > { %v464_v48 = vmul.f32 %v463_v45, %v1095_v12  ;;  %v467_v49 = vstv %s1111_s9  ;;  %s1134_s15 = sld [smem:[#allocation6]]  ;;  %v450_v62 = vadd.f32 %v449_v47, %v446_v46 }
  0x5f   : > { %v461_v52 = vadd.f32 %v460_v44, %v457_v43  ;;  %v472_v53 = vstv %s1113_s10  ;;  %s1137_s17 = sld [smem:[#allocation7]]  ;;  %v468_v60 = vmul.f32 %v467_v49, %v413_v23 }
  0x60   : > { %v473_v56 = vmul.f32 %v472_v53, %v1079_v0  ;;  %v475_v57 = vstv %s1117_s12  ;;  %s1141_s18 = sld [smem:[#allocation6 + $0x1]]  ;;  %v387_v0 = vadd.f32 %v382_v50, %v363_v41  ;;  %v1162_v14 = vmax.f32 %v450_v62, 0.0 }
  0x61   : > { %v465_v59 = vadd.f32 %v464_v48, %v461_v52  ;;  %v478_v61 = vstv %s1121_s13  ;;  %s1144_s19 = sld [smem:[#allocation6 + $0x2]] }
  0x62   : > { %v476_v63 = vadd.f32 %v475_v57, %v473_v56  ;;  %v479_v1 = vmul.f32 %v478_v61, %v1086_v4  ;;  %v482_v2 = vstv %s1125_s28  ;;  %s1148_s20 = sld [smem:[#allocation6 + $0x3]]  ;;  %v392_v17 = vadd.f32 %v390_v55, %v387_v0 }
  0x63   : > { %v483_v5 = vmul.f32 %v482_v2, %v1095_v12  ;;  %v486_v6 = vstv %s1130_s14  ;;  %s751_s24 = sld [smem:[#allocation6 + $0x80]]  ;;  %v469_v10 = vadd.f32 %v468_v60, %v465_v59  ;;  %v388_v12 = vadd.f32 %v386_v58, %v367_v54 }
  0x64   : > { %v480_v7 = vadd.f32 %v479_v1, %v476_v63  ;;  %v487_v8 = vmul.f32 %v486_v6, %v413_v23  ;;  %v491_v9 = vstv %s1134_s15  ;;  %s1155_s25 = sld [smem:[#allocation7 + $0x1]]  ;;  %v368_v23 = vmul.f32 %v364_v13, %v364_v13 }
  0x65   : > { %v492_v4 = vmul.f32 %v491_v9, %v1150_v3  ;;  %v494_v11 = vstv %s1137_s17  ;;  %s1159_s26 = sld [smem:[#allocation6 + $0x81]]  ;;  %v470_v24 = vmax.f32 %v469_v10, 0.0  ;;  %v396_v30 = vadd.f32 %v394_v18, %v388_v12 }
  0x66   : > { %v484_v15 = vadd.f32 %v483_v5, %v480_v7  ;;  %v497_v16 = vstv %s1141_s18  ;;  %s754_s27 = sld [smem:[#allocation6 + $0x82]]  ;;  %v397_v31 = vadd.f32 %v392_v17, %v364_v13  ;;  %v404_v45 = vrot.slane %v368_v23, 4 }
  0x67   : > { %s755_s7 = sld [smem:[#allocation6 + $0x83]]  ;;  %v495_v20 = vadd.f32 %v494_v11, %v492_v4  ;;  %v498_v21 = vmul.f32 %v497_v16, %v1162_v14  ;;  %v501_v22 = vstv %s1144_s19  ;;  %v398_v44 = vadd.f32 %v396_v30, %v368_v23  ;;  %s360_s19 = scalar_lea.vmem %s1202_s6, %s728_s11 }
  0x68   : > { %v488_v19 = vadd.f32 %v487_v8, %v484_v15  ;;  %s756_s29 = sld [smem:[#allocation6 + $0x100]]  ;;  %v502_v32 = vmul.f32 %v501_v22, %v470_v24  ;;  %v505_v40 = vstv %s1148_s20  ;;  %v402_v48 = vadd.f32 %v400_v26, %v397_v31 }
  0x69   : > { %v509_v25 = vstv %s751_s24  ;;  %s1167_s16 = sld [smem:[#allocation7 + $0x2]]  ;;  %v499_v34 = vadd.f32 %v498_v21, %v495_v20  ;;  %v406_v62 = vadd.f32 %v404_v45, %v398_v44 }
  0x6a   : > { %v489_v27 = vmax.f32 %v488_v19, 0.0  ;;  %v510_v28 = vmul.f32 %v509_v25, %v1150_v3  ;;  %v512_v29 = vstv %s1155_s25  ;;  %s1171_s8 = sld [smem:[#allocation6 + $0x101]]  ;;  %v407_v2 = vmul.f32 %v402_v48, %v402_v48 }
  0x6b   : > { %v515_v33 = vstv %s1159_s26  ;;  %s759_s9 = sld [smem:[#allocation6 + $0x102]]  ;;  %v503_v49 = vadd.f32 %v502_v32, %v499_v34 }
  0x6c   : > { %v513_v35 = vadd.f32 %v512_v29, %v510_v28  ;;  %v516_v36 = vmul.f32 %v515_v33, %v1162_v14  ;;  %v519_v37 = vstv %s754_s27  ;;  %s760_s10 = sld [smem:[#allocation6 + $0x103]]  ;;  %v506_v52 = vmul.f32 %v505_v40, %v489_v27 }
  0x6d   : > { %v520_v38 = vmul.f32 %v519_v37, %v470_v24  ;;  %v523_v39 = vstv %s755_s7  ;;  %s761_s12 = sld [smem:[#allocation6 + $0x180]]  ;;  %v408_v12 = vsub.f32 %v407_v2, %v406_v62 }
  0x6e   : > { %v517_v41 = vadd.f32 %v516_v36, %v513_v35  ;;  %v524_v42 = vmul.f32 %v523_v39, %v489_v27  ;;  %v527_v43 = vstv %s756_s29  ;;  %s762_s13 = sld [smem:[#allocation7 + $0x3]]  ;;  %v507_v0 = vadd.f32 %v506_v52, %v503_v49 }
  0x6f   : > { %v528_v46 = vmul.f32 %v527_v43, %v1150_v3  ;;  %v530_v47 = vstv %s1167_s16  ;;  %s763_s28 = sld [smem:[#allocation6 + $0x181]]  ;;  %v409_v20 = vmul.f32 0.5, %v408_v12 }
  0x70   : > { %v521_v50 = vadd.f32 %v520_v38, %v517_v41  ;;  %v533_v51 = vstv %s1171_s8  ;;  %s764_s14 = sld [smem:[#allocation6 + $0x182]] }
  0x71   : > { %v531_v53 = vadd.f32 %v530_v47, %v528_v46  ;;  %v534_v54 = vmul.f32 %v533_v51, %v1162_v14  ;;  %v537_v55 = vstv %s759_s9  ;;  %s765_s15 = sld [smem:[#allocation6 + $0x183]] }
  0x72   : > { %v525_v56 = vadd.f32 %v524_v42, %v521_v50  ;;  %v538_v57 = vmul.f32 %v537_v55, %v470_v24  ;;  %v541_v58 = vstv %s760_s10 }
  0x73   : > { %v535_v59 = vadd.f32 %v534_v54, %v531_v53  ;;  %v542_v60 = vmul.f32 %v541_v58, %v489_v27  ;;  %v545_v61 = vstv %s761_s12 }
  0x74   : > { %v546_v63 = vmul.f32 %v545_v61, %v1150_v3  ;;  %v548_v1 = vstv %s762_s13  ;;  %v563_v10 = vrot.slane %v525_v56, 7 }
  0x75   : > { %v539_v5 = vadd.f32 %v538_v57, %v535_v59  ;;  %v551_v6 = vstv %s763_s28 }
  0x76   : > { %v549_v7 = vadd.f32 %v548_v1, %v546_v63  ;;  %v552_v8 = vmul.f32 %v551_v6, %v1162_v14  ;;  %v555_v9 = vstv %s764_s14  ;;  %v572_v18 = vsel %vm571_vm0, %v507_v0, %v563_v10 }
  0x77   : > { %v543_v4 = vadd.f32 %v542_v60, %v539_v5  ;;  %v556_v11 = vmul.f32 %v555_v9, %v470_v24  ;;  %v559_v13 = vstv %s765_s15 }
  0x78   : > { %v553_v15 = vadd.f32 %v552_v8, %v549_v7  ;;  %v560_v16 = vmul.f32 %v559_v13, %v489_v27 }
  0x79   : > { %v566_v17 = vrot.slane %v543_v4, 6 }
  0x7a   : > { %v557_v3 = vadd.f32 %v556_v11, %v553_v15 }
  0x7b   : > { %v574_v21 = vsel %vm573_vm1, %v572_v18, %v566_v17 }
  0x7c   : > { %v561_v19 = vadd.f32 %v560_v16, %v557_v3 }
  0x7e   : > { %v569_v22 = vrot.slane %v561_v19, 5 }
  0x80   : > { %v576_v14 = vsel %vm575_vm2, %v574_v21, %v569_v22 }
  0x81   : > { %v577_v23 = vadd.f32 %v576_v14, %v409_v20 }
  0x83   : > { %578 = vst [vmem:[%s360_s19] sm:$0xf] %v577_v23 }
  0x84 PF: > { %s19_s23 = sadd.s32 1, %s928_s23   ;;  %s1212_s21 = smov %s924_s22 }
  0x85   : > { %p16_p8 = scmp.ge.s32.totalorder %s19_s23, 4   ;;  %s1213_s22 = smov %s1215_s30 }
  0x87   :  { %18 = sbr.rel (!%p16_p8) target bundleno = 4 (0x4), region = 94 }
  0x8c   :  { %604 = vsyncpa [#allocation3], 1 }
  0x8d   :  { %606 = vsyncpa [#allocation3 + $0x1], 1 }
  0x8e   :  { %607 = vsyncpa [#allocation5], 1 }
  0x8f   :  { %608 = vsyncpa [#allocation8], 1 }

</bundles_post_ra>
